<compile_context>
chip_gen: v7x
topology: tpu7x:2x2x1
jax: 0.10.0
libtpu: 0.0.40
codegen_flags: <defaults>
</compile_context>

<pallas_src>
import functools

import jax
import jax.numpy as jnp
from jax.experimental import pallas as pl
from jax.experimental.pallas import tpu as pltpu

LANE = 128
SUBLANE = 8
MAX_CORES = 2                       # leading "parallel" grid axis (2 TCs on v7x)
CHUNK_ROWS = 128                    # in-kernel chunk: 128*128 f32 = 16 vregs/value
TARGET_BLOCK_BYTES = 4 * 1024 * 1024   # ~4 MiB per input block
VMEM_LIMIT_BYTES = 40 * 1024 * 1024    # safe on v5e/v6e (128 MiB) and v7x (64 MiB)


def _round_up(x, m):
    return ((x + m - 1) // m) * m


def _sigmoid(x):
    # Single-EUP form (one tanh push) instead of exp + reciprocal.
    return 0.5 * (jnp.tanh(0.5 * x) + 1.0)


def _block_partials(p_ref, t_ref, *, chunk, nchunks, valid_rows, masked):
    """Sum sigmoid(p)*t, sigmoid(p) and t over `nchunks` row-chunks of a block.

    Returns two (8, 128) f32 lane-parallel partial sums (intersection, union
    contributions).  The chunk loop bounds vreg pressure so big DMA blocks
    never force large VMEM intermediates.
    """
    def body(j, carry):
        acc_i, acc_u = carry
        r0 = pl.multiple_of(j * chunk, chunk)
        p = _sigmoid(p_ref[pl.ds(r0, chunk), :].astype(jnp.float32))
        t = t_ref[pl.ds(r0, chunk), :].astype(jnp.float32)
        if masked:
            # Rows >= valid_rows were never DMA'd (the boundary block is
            # clamped at the array edge), so that VMEM is stale garbage and
            # may contain NaN/inf.  Every such row MUST be zeroed before
            # accumulation; jnp.where blocks NaN propagation because masked
            # positions never enter the sums.  `valid_rows` is derived from
            # the true element count in the wrapper -- keep them in sync.
            row = jax.lax.broadcasted_iota(jnp.int32, (chunk, LANE), 0) + r0
            keep = row < valid_rows
            p = jnp.where(keep, p, 0.0)
            t = jnp.where(keep, t, 0.0)
        # (chunk,128) -> (chunk//8, 8, 128) is a free re-tiling; the axis-0 sum
        # is pure VPU vreg adds that hide under the streaming DMA.  The full
        # cross-lane/sublane reduce happens once, in the wrapper.
        acc_i = acc_i + jnp.sum((p * t).reshape(-1, SUBLANE, LANE), axis=0)
        acc_u = (acc_u
                 + jnp.sum(p.reshape(-1, SUBLANE, LANE), axis=0)
                 + jnp.sum(t.reshape(-1, SUBLANE, LANE), axis=0))
        return acc_i, acc_u

    zero = jnp.zeros((SUBLANE, LANE), jnp.float32)
    return jax.lax.fori_loop(0, nchunks, body, (zero, zero))


def _dice_kernel(p_ref, t_ref, out_ref, *, chunk, total_blocks, spc, rem_rows):
    """Accumulate per-core partial sums of sigmoid(p)*t and sigmoid(p)+t.

    p_ref, t_ref : (tr, 128) tiles of the lane-aligned flattened inputs
                   (native dtype; cast to f32 in-kernel).
    out_ref      : (1, 2, 8, 128) f32 per-core accumulator block
                   (channel 0: intersection partials, channel 1: union partials).
    """
    c = pl.program_id(0)          # "parallel" (core) axis
    i = pl.program_id(1)          # sequential reduction axis
    blk = c * spc + i             # global row-block index
    tr = p_ref.shape[0]
    nchunks = tr // chunk

    @pl.when(i == 0)
    def _():
        out_ref[...] = jnp.zeros_like(out_ref)

    @pl.when(blk < total_blocks - 1)      # full interior block: no mask needed
    def _():
        acc_i, acc_u = _block_partials(
            p_ref, t_ref, chunk=chunk, nchunks=nchunks,
            valid_rows=tr, masked=False)
        out_ref[0, 0, :, :] += acc_i
        out_ref[0, 1, :, :] += acc_u

    @pl.when(blk == total_blocks - 1)     # last valid block: mask ragged rows
    def _():
        acc_i, acc_u = _block_partials(
            p_ref, t_ref, chunk=chunk, nchunks=pl.cdiv(rem_rows, chunk),
            valid_rows=rem_rows, masked=True)
        out_ref[0, 0, :, :] += acc_i
        out_ref[0, 1, :, :] += acc_u

    # Blocks with blk >= total_blocks (over-partitioned parallel axis on the
    # last core) skip both branches and contribute nothing.


def dice_loss(predict, target, epsilon=1e-5):
    """Global-sum dice loss, matching the reference PyTorch DiceLoss.forward.

    Inputs may be any floating dtype (bf16 logits / low-precision masks are the
    fast path for this HBM-bound kernel); everything is cast to f32 in-kernel.
    """
    assert predict.shape == target.shape, "predict/target shapes must match"

    p_flat = predict.reshape(-1)
    t_flat = target.reshape(-1)
    n = p_flat.shape[0]
    n_main = (n // LANE) * LANE   # lane-aligned prefix -> kernel
    tail = n - n_main             # <128 ragged elements -> plain-JAX finalize

    intersection = jnp.float32(0.0)
    union = jnp.float32(0.0)

    if n_main:
        # Free reshape when already lane-aligned; otherwise a prefix slice
        # (no full padded copy of both inputs).
        p_main = p_flat if tail == 0 else p_flat[:n_main]
        t_main = t_flat if tail == 0 else t_flat[:n_main]
        rows = n_main // LANE
        p2 = p_main.reshape(rows, LANE)
        t2 = t_main.reshape(rows, LANE)

        # Tile sizing: ~4 MiB per input block -> ~8 MiB HBM per grid step,
        # 16 MiB double-buffered input VMEM for f32 (less for bf16), well
        # under the explicit 40 MiB scoped-VMEM limit on all generations.
        itemsize = max(p2.dtype.itemsize, t2.dtype.itemsize)
        tr_cap = max(CHUNK_ROWS,
                     (TARGET_BLOCK_BYTES // (LANE * itemsize))
                     // CHUNK_ROWS * CHUNK_ROWS)
        if rows >= CHUNK_ROWS:
            tr = min(tr_cap, _round_up(rows, CHUNK_ROWS))
            chunk = CHUNK_ROWS
        else:
            tr = _round_up(rows, SUBLANE)
            chunk = tr

        total_blocks = pl.cdiv(rows, tr)
        ncores = min(MAX_CORES, total_blocks)    # collapses to 1 for small inputs
        spc = pl.cdiv(total_blocks, ncores)      # row-blocks per core
        rem_rows = rows - (total_blocks - 1) * tr  # valid rows in last block

        def in_map(c, i):
            # Clamp so the DMA never indexes past the last block; duplicated
            # (over-partitioned) blocks are skipped inside the kernel.
            return (jnp.minimum(c * spc + i, total_blocks - 1), 0)

        kernel = functools.partial(
            _dice_kernel, chunk=chunk, total_blocks=total_blocks, spc=spc,
            rem_rows=rem_rows)

        partials = pl.pallas_call(
            kernel,
            out_shape=jax.ShapeDtypeStruct((ncores, 2, SUBLANE, LANE),
                                           jnp.float32),
            grid=(ncores, spc),
            in_specs=[pl.BlockSpec((tr, LANE), in_map),
                      pl.BlockSpec((tr, LANE), in_map)],
            out_specs=pl.BlockSpec((1, 2, SUBLANE, LANE),
                                   lambda c, i: (c, 0, 0, 0)),
            compiler_params=pltpu.CompilerParams(
                # "parallel" shards the leading axis across TensorCores on
                # multi-TC parts and is a cheap serial loop on v5e/v6e.
                dimension_semantics=("parallel", "arbitrary"),
                vmem_limit_bytes=VMEM_LIMIT_BYTES),
        )(p2, t2)

        # Tiny final cross-core / cross-lane reduce in plain JAX.
        intersection = intersection + jnp.sum(partials[:, 0])
        union = union + jnp.sum(partials[:, 1])

    if tail:
        p_t = _sigmoid(p_flat[n_main:].astype(jnp.float32))
        t_t = t_flat[n_main:].astype(jnp.float32)
        intersection = intersection + jnp.sum(p_t * t_t)
        union = union + jnp.sum(p_t) + jnp.sum(t_t)

    eps = jnp.float32(epsilon)
    return 1.0 - 2.0 * (intersection + eps) / (union + eps)


def _dice_loss_ref(predict, target, epsilon=1e-5):
    num = predict.shape[0]
    pred = jax.nn.sigmoid(predict).reshape(num, -1)
    targ = target.reshape(num, -1)
    intersection = jnp.sum(pred * targ)
    union = jnp.sum(pred + targ)
    return 1.0 - 2.0 * (intersection + epsilon) / (union + epsilon)


if __name__ == "__main__":
    key = jax.random.PRNGKey(0)
    k1, k2 = jax.random.split(key)

    # 1) Segmentation-style NCHW logits vs. binary mask (lane-aligned).
    predict = jax.random.normal(k1, (2, 4, 16, 16), dtype=jnp.float32)
    target = (jax.random.uniform(k2, (2, 4, 16, 16)) > 0.5).astype(jnp.float32)
    score = jax.block_until_ready(dice_loss(predict, target))
    ref = _dice_loss_ref(predict, target)
    assert jnp.allclose(score, ref, atol=1e-5, rtol=1e-5), (score, ref)

    # 2) Non-lane-aligned shape: exercises the in-kernel ragged-row mask and
    #    the plain-JAX tail path (no padded copy of the inputs).
    predict2 = jax.random.normal(k1, (2, 3, 7, 5), dtype=jnp.float32)
    target2 = (jax.random.uniform(k2, (2, 3, 7, 5)) > 0.5).astype(jnp.float32)
    score2 = jax.block_until_ready(dice_loss(predict2, target2))
    ref2 = _dice_loss_ref(predict2, target2)
    assert jnp.allclose(score2, ref2, atol=1e-5, rtol=1e-5), (score2, ref2)

    # 3) Low-precision fast path: bf16 logits (cast to f32 in-kernel) halves
    #    HBM traffic for this memory-bound reduction.
    predict3 = jax.random.normal(k1, (2, 4, 16, 16), dtype=jnp.bfloat16)
    target3 = (jax.random.uniform(k2, (2, 4, 16, 16)) > 0.5).astype(jnp.float32)
    score3 = jax.block_until_ready(dice_loss(predict3, target3))
    ref3 = _dice_loss_ref(predict3.astype(jnp.float32), target3)
    assert jnp.allclose(score3, ref3, atol=1e-3, rtol=1e-3), (score3, ref3)

    print("KERNEL_OK")
</pallas_src>

<mosaic_0001>
module attributes {stable_mosaic.version = 11 : i64} {
  func.func @_dice_kernel(%arg0: i32, %arg1: i32, %arg2: memref<16x128xf32, #tpu.memory_space<vmem>>, %arg3: memref<16x128xf32, #tpu.memory_space<vmem>>, %arg4: memref<1x2x8x128xf32, #tpu.memory_space<vmem>>) attributes {dimension_semantics = [#tpu.dimension_semantics<parallel>, #tpu.dimension_semantics<arbitrary>], iteration_bounds = array<i64: 1, 1>, scalar_prefetch = 0 : i64, scratch_operands = 0 : i64, tpu.core_type = #tpu.core_type<tc>, window_params = [{transform_indices = @transform_0, window_bounds = array<i64: 16, 128>}, {transform_indices = @transform_1, window_bounds = array<i64: 16, 128>}, {transform_indices = @transform_2, window_bounds = array<i64: 1, 2, 8, 128>}]} {
    %c1_i32 = arith.constant 1 : i32
    %0 = arith.muli %arg0, %c1_i32 : i32
    %1 = arith.addi %0, %arg1 : i32
    %c0_i32 = arith.constant 0 : i32
    %2 = arith.cmpi eq, %arg1, %c0_i32 : i32
    %3 = arith.extui %2 : i1 to i32
    %c0_i32_0 = arith.constant 0 : i32
    %4 = arith.cmpi ne, %3, %c0_i32_0 : i32
    scf.if %4 {
      %cst = arith.constant 0.000000e+00 : f32
      %11 = vector.broadcast %cst : f32 to vector<1x2x8x128xf32>
      %c0 = arith.constant 0 : index
      %c0_5 = arith.constant 0 : index
      %c0_6 = arith.constant 0 : index
      %c0_7 = arith.constant 0 : index
      %12 = vector.load %arg4[%c0, %c0_5, %c0_6, %c0_7] : memref<1x2x8x128xf32, #tpu.memory_space<vmem>>, vector<1x2x8x128xf32>
      tpu.vector_store %arg4[%c0, %c0_5, %c0_6, %c0_7], %11 {strides = array<i32>} : memref<1x2x8x128xf32, #tpu.memory_space<vmem>>, vector<1x2x8x128xf32>,
    } else {
    }
    %c0_i32_1 = arith.constant 0 : i32
    %5 = arith.cmpi slt, %1, %c0_i32_1 : i32
    %6 = arith.extui %5 : i1 to i32
    %c0_i32_2 = arith.constant 0 : i32
    %7 = arith.cmpi ne, %6, %c0_i32_2 : i32
    scf.if %7 {
      %cst = arith.constant 0.000000e+00 : f32
      %11 = vector.broadcast %cst : f32 to vector<8x128xf32>
      %c0_i32_5 = arith.constant 0 : i32
      %c16_i32 = arith.constant 16 : i32
      %12 = arith.muli %c0_i32_5, %c16_i32 : i32
      %13 = tpu.assume_multiple %12, 16 : i32
      %14 = arith.index_cast %13 : i32 to index
      %c0 = arith.constant 0 : index
      %15 = vector.load %arg2[%14, %c0] : memref<16x128xf32, #tpu.memory_space<vmem>>, vector<16x128xf32>
      %cst_6 = arith.constant 5.000000e-01 : f32
      %16 = vector.broadcast %cst_6 : f32 to vector<16x128xf32>
      %17 = arith.mulf %16, %15 : vector<16x128xf32>
      %18 = math.tanh %17 : vector<16x128xf32>
      %cst_7 = arith.constant 1.000000e+00 : f32
      %19 = vector.broadcast %cst_7 : f32 to vector<16x128xf32>
      %20 = arith.addf %18, %19 : vector<16x128xf32>
      %cst_8 = arith.constant 5.000000e-01 : f32
      %21 = vector.broadcast %cst_8 : f32 to vector<16x128xf32>
      %22 = arith.mulf %21, %20 : vector<16x128xf32>
      %23 = arith.index_cast %13 : i32 to index
      %c0_9 = arith.constant 0 : index
      %24 = vector.load %arg3[%23, %c0_9] : memref<16x128xf32, #tpu.memory_space<vmem>>, vector<16x128xf32>
      %25 = arith.mulf %22, %24 : vector<16x128xf32>
      %26 = vector.shape_cast %25 : vector<16x128xf32> to vector<2x8x128xf32>
      %cst_10 = arith.constant dense<0.000000e+00> : vector<8x128xf32>
      %27 = vector.multi_reduction <add>, %26, %cst_10 [0] : vector<2x8x128xf32> to vector<8x128xf32>
      %28 = arith.addf %11, %27 : vector<8x128xf32>
      %29 = vector.shape_cast %22 : vector<16x128xf32> to vector<2x8x128xf32>
      %cst_11 = arith.constant dense<0.000000e+00> : vector<8x128xf32>
      %30 = vector.multi_reduction <add>, %29, %cst_11 [0] : vector<2x8x128xf32> to vector<8x128xf32>
      %31 = arith.addf %11, %30 : vector<8x128xf32>
      %32 = vector.shape_cast %24 : vector<16x128xf32> to vector<2x8x128xf32>
      %cst_12 = arith.constant dense<0.000000e+00> : vector<8x128xf32>
      %33 = vector.multi_reduction <add>, %32, %cst_12 [0] : vector<2x8x128xf32> to vector<8x128xf32>
      %34 = arith.addf %31, %33 : vector<8x128xf32>
      %c1_i32_13 = arith.constant 1 : i32
      %c0_14 = arith.constant 0 : index
      %c0_15 = arith.constant 0 : index
      %c0_16 = arith.constant 0 : index
      %c0_17 = arith.constant 0 : index
      %35 = vector.load %arg4[%c0_14, %c0_15, %c0_16, %c0_17] : memref<1x2x8x128xf32, #tpu.memory_space<vmem>>, vector<1x1x8x128xf32>
      %36 = vector.shape_cast %35 : vector<1x1x8x128xf32> to vector<8x128xf32>
      %37 = arith.addf %36, %28 : vector<8x128xf32>
      %c0_18 = arith.constant 0 : index
      %c0_19 = arith.constant 0 : index
      %c0_20 = arith.constant 0 : index
      %c0_21 = arith.constant 0 : index
      %38 = vector.load %arg4[%c0_18, %c0_19, %c0_20, %c0_21] : memref<1x2x8x128xf32, #tpu.memory_space<vmem>>, vector<1x1x8x128xf32>
      %39 = vector.shape_cast %38 : vector<1x1x8x128xf32> to vector<8x128xf32>
      %40 = vector.shape_cast %37 : vector<8x128xf32> to vector<1x1x8x128xf32>
      tpu.vector_store %arg4[%c0_18, %c0_19, %c0_20, %c0_21], %40 {strides = array<i32>} : memref<1x2x8x128xf32, #tpu.memory_space<vmem>>, vector<1x1x8x128xf32>,
      %c0_22 = arith.constant 0 : index
      %c1 = arith.constant 1 : index
      %c0_23 = arith.constant 0 : index
      %c0_24 = arith.constant 0 : index
      %41 = vector.load %arg4[%c0_22, %c1, %c0_23, %c0_24] : memref<1x2x8x128xf32, #tpu.memory_space<vmem>>, vector<1x1x8x128xf32>
      %42 = vector.shape_cast %41 : vector<1x1x8x128xf32> to vector<8x128xf32>
      %43 = arith.addf %42, %34 : vector<8x128xf32>
      %c0_25 = arith.constant 0 : index
      %c1_26 = arith.constant 1 : index
      %c0_27 = arith.constant 0 : index
      %c0_28 = arith.constant 0 : index
      %44 = vector.load %arg4[%c0_25, %c1_26, %c0_27, %c0_28] : memref<1x2x8x128xf32, #tpu.memory_space<vmem>>, vector<1x1x8x128xf32>
      %45 = vector.shape_cast %44 : vector<1x1x8x128xf32> to vector<8x128xf32>
      %46 = vector.shape_cast %43 : vector<8x128xf32> to vector<1x1x8x128xf32>
      tpu.vector_store %arg4[%c0_25, %c1_26, %c0_27, %c0_28], %46 {strides = array<i32>} : memref<1x2x8x128xf32, #tpu.memory_space<vmem>>, vector<1x1x8x128xf32>,
    } else {
    }
    %c0_i32_3 = arith.constant 0 : i32
    %8 = arith.cmpi eq, %1, %c0_i32_3 : i32
    %9 = arith.extui %8 : i1 to i32
    %c0_i32_4 = arith.constant 0 : i32
    %10 = arith.cmpi ne, %9, %c0_i32_4 : i32
    scf.if %10 {
      %cst = arith.constant 0.000000e+00 : f32
      %11 = vector.broadcast %cst : f32 to vector<8x128xf32>
      %c0_i32_5 = arith.constant 0 : i32
      %c16_i32 = arith.constant 16 : i32
      %12 = arith.muli %c0_i32_5, %c16_i32 : i32
      %13 = tpu.assume_multiple %12, 16 : i32
      %14 = arith.index_cast %13 : i32 to index
      %c0 = arith.constant 0 : index
      %15 = vector.load %arg2[%14, %c0] : memref<16x128xf32, #tpu.memory_space<vmem>>, vector<16x128xf32>
      %cst_6 = arith.constant 5.000000e-01 : f32
      %16 = vector.broadcast %cst_6 : f32 to vector<16x128xf32>
      %17 = arith.mulf %16, %15 : vector<16x128xf32>
      %18 = math.tanh %17 : vector<16x128xf32>
      %cst_7 = arith.constant 1.000000e+00 : f32
      %19 = vector.broadcast %cst_7 : f32 to vector<16x128xf32>
      %20 = arith.addf %18, %19 : vector<16x128xf32>
      %cst_8 = arith.constant 5.000000e-01 : f32
      %21 = vector.broadcast %cst_8 : f32 to vector<16x128xf32>
      %22 = arith.mulf %21, %20 : vector<16x128xf32>
      %23 = arith.index_cast %13 : i32 to index
      %c0_9 = arith.constant 0 : index
      %24 = vector.load %arg3[%23, %c0_9] : memref<16x128xf32, #tpu.memory_space<vmem>>, vector<16x128xf32>
      %25 = tpu.iota {dimensions = array<i32: 0>} : vector<16x128xi32>
      %26 = vector.broadcast %13 : i32 to vector<16x128xi32>
      %27 = arith.addi %25, %26 : vector<16x128xi32>
      %c16_i32_10 = arith.constant 16 : i32
      %28 = vector.broadcast %c16_i32_10 : i32 to vector<16x128xi32>
      %29 = arith.cmpi slt, %27, %28 : vector<16x128xi32>
      %cst_11 = arith.constant 0.000000e+00 : f32
      %30 = vector.broadcast %cst_11 : f32 to vector<16x128xf32>
      %31 = arith.select %29, %22, %30 : vector<16x128xi1>, vector<16x128xf32>
      %cst_12 = arith.constant 0.000000e+00 : f32
      %32 = vector.broadcast %cst_12 : f32 to vector<16x128xf32>
      %33 = arith.select %29, %24, %32 : vector<16x128xi1>, vector<16x128xf32>
      %34 = arith.mulf %31, %33 : vector<16x128xf32>
      %35 = vector.shape_cast %34 : vector<16x128xf32> to vector<2x8x128xf32>
      %cst_13 = arith.constant dense<0.000000e+00> : vector<8x128xf32>
      %36 = vector.multi_reduction <add>, %35, %cst_13 [0] : vector<2x8x128xf32> to vector<8x128xf32>
      %37 = arith.addf %11, %36 : vector<8x128xf32>
      %38 = vector.shape_cast %31 : vector<16x128xf32> to vector<2x8x128xf32>
      %cst_14 = arith.constant dense<0.000000e+00> : vector<8x128xf32>
      %39 = vector.multi_reduction <add>, %38, %cst_14 [0] : vector<2x8x128xf32> to vector<8x128xf32>
      %40 = arith.addf %11, %39 : vector<8x128xf32>
      %41 = vector.shape_cast %33 : vector<16x128xf32> to vector<2x8x128xf32>
      %cst_15 = arith.constant dense<0.000000e+00> : vector<8x128xf32>
      %42 = vector.multi_reduction <add>, %41, %cst_15 [0] : vector<2x8x128xf32> to vector<8x128xf32>
      %43 = arith.addf %40, %42 : vector<8x128xf32>
      %c1_i32_16 = arith.constant 1 : i32
      %c0_17 = arith.constant 0 : index
      %c0_18 = arith.constant 0 : index
      %c0_19 = arith.constant 0 : index
      %c0_20 = arith.constant 0 : index
      %44 = vector.load %arg4[%c0_17, %c0_18, %c0_19, %c0_20] : memref<1x2x8x128xf32, #tpu.memory_space<vmem>>, vector<1x1x8x128xf32>
      %45 = vector.shape_cast %44 : vector<1x1x8x128xf32> to vector<8x128xf32>
      %46 = arith.addf %45, %37 : vector<8x128xf32>
      %c0_21 = arith.constant 0 : index
      %c0_22 = arith.constant 0 : index
      %c0_23 = arith.constant 0 : index
      %c0_24 = arith.constant 0 : index
      %47 = vector.load %arg4[%c0_21, %c0_22, %c0_23, %c0_24] : memref<1x2x8x128xf32, #tpu.memory_space<vmem>>, vector<1x1x8x128xf32>
      %48 = vector.shape_cast %47 : vector<1x1x8x128xf32> to vector<8x128xf32>
      %49 = vector.shape_cast %46 : vector<8x128xf32> to vector<1x1x8x128xf32>
      tpu.vector_store %arg4[%c0_21, %c0_22, %c0_23, %c0_24], %49 {strides = array<i32>} : memref<1x2x8x128xf32, #tpu.memory_space<vmem>>, vector<1x1x8x128xf32>,
      %c0_25 = arith.constant 0 : index
      %c1 = arith.constant 1 : index
      %c0_26 = arith.constant 0 : index
      %c0_27 = arith.constant 0 : index
      %50 = vector.load %arg4[%c0_25, %c1, %c0_26, %c0_27] : memref<1x2x8x128xf32, #tpu.memory_space<vmem>>, vector<1x1x8x128xf32>
      %51 = vector.shape_cast %50 : vector<1x1x8x128xf32> to vector<8x128xf32>
      %52 = arith.addf %51, %43 : vector<8x128xf32>
      %c0_28 = arith.constant 0 : index
      %c1_29 = arith.constant 1 : index
      %c0_30 = arith.constant 0 : index
      %c0_31 = arith.constant 0 : index
      %53 = vector.load %arg4[%c0_28, %c1_29, %c0_30, %c0_31] : memref<1x2x8x128xf32, #tpu.memory_space<vmem>>, vector<1x1x8x128xf32>
      %54 = vector.shape_cast %53 : vector<1x1x8x128xf32> to vector<8x128xf32>
      %55 = vector.shape_cast %52 : vector<8x128xf32> to vector<1x1x8x128xf32>
      tpu.vector_store %arg4[%c0_28, %c1_29, %c0_30, %c0_31], %55 {strides = array<i32>} : memref<1x2x8x128xf32, #tpu.memory_space<vmem>>, vector<1x1x8x128xf32>,
    } else {
    }
    return
  }
  func.func @transform_0(%arg0: i32, %arg1: i32) -> (i32, i32) {
    %c1_i32 = arith.constant 1 : i32
    %0 = arith.muli %arg0, %c1_i32 : i32
    %1 = arith.addi %0, %arg1 : i32
    %c0_i32 = arith.constant 0 : i32
    %2 = arith.minsi %1, %c0_i32 : i32
    %c0_i32_0 = arith.constant 0 : i32
    %c0_i32_1 = arith.constant 0 : i32
    return %2, %c0_i32_0 : i32, i32
  }
  func.func @transform_1(%arg0: i32, %arg1: i32) -> (i32, i32) {
    %c1_i32 = arith.constant 1 : i32
    %0 = arith.muli %arg0, %c1_i32 : i32
    %1 = arith.addi %0, %arg1 : i32
    %c0_i32 = arith.constant 0 : i32
    %2 = arith.minsi %1, %c0_i32 : i32
    %c0_i32_0 = arith.constant 0 : i32
    %c0_i32_1 = arith.constant 0 : i32
    return %2, %c0_i32_0 : i32, i32
  }
  func.func @transform_2(%arg0: i32, %arg1: i32) -> (i32, i32, i32, i32) {
    %c0_i32 = arith.constant 0 : i32
    %c0_i32_0 = arith.constant 0 : i32
    %c0_i32_1 = arith.constant 0 : i32
    %c0_i32_2 = arith.constant 0 : i32
    return %arg0, %c0_i32, %c0_i32_0, %c0_i32_1 : i32, i32, i32, i32
  }
}

</mosaic_0001>

<bundles_post_ra>
// kernel: tpu_custom_call.1
= control target key start
LH: loop header
LB: loop body
LE: loop exit
PB: predicated region body
PF: predicated region fallthrough
CT: control target
= control target key end

     0   :  { %7 = vsyncpa [#allocation3], 0  ;;  %s310_s0 = inlined_call_operand.hbm [shape: f32[16,128], index: 0, kind: input, shape index: {}]   ;;  %s311_s1 = inlined_call_operand.hbm [shape: f32[16,128], index: 1, kind: input, shape index: {}]   ;;  %s312_s2 = inlined_call_operand.hbm [shape: f32[1,2,8,128], index: 2, kind: output, shape index: {}]  }
   0x1   :  { %8 = vsyncpa [#allocation6], 0 }
   0x2   :  { %9 = vsyncpa [#allocation4], 0  ;;  %s245_s9 = smov [#allocation2]   ;;  %s173_s13 = scalar_lea.hbm %s310_s0, 256 }
   0x3   :  { %s21_s10 = sshll.u32 %s245_s9, 4  ;;  %p174_p0 = scmp.ne.s32.totalorder %s310_s0, %s173_s13  ;;  %s22_s10 = int_to_ptr.vmem [resolvable:$true] %s21_s10 }
   0x4   :  { %p177_p1 = scmp.lt.u32.totalorder %s173_s13, %s310_s0 }
   0x6   :  { %p179_p2 = pnand %p177_p1, %p174_p0 }
   0x8   :  { %182 = shalt.err (!%p179_p2)
}
   0x9   :  { %s183_s18 = scalar_lea.vmem %s22_s10, 256  ;;  %p188_p4 = scmp.lt.s32.totalorder %s22_s10, %s22_s10 }
   0xa   :  { %p184_p3 = scmp.ne.s32.totalorder %s22_s10, %s183_s18  ;;  %p189_p5 = scmp.lt.s32.totalorder %s183_s18, %s183_s18 }
   0xc   :  { %p190_p6 = por %p189_p5, %p188_p4 }
   0xe   :  { %p191_p7 = pnand %p190_p6, %p184_p3 }
  0x10   :  { %194 = shalt.err (!%p191_p7)
}
  0x11   :  { %s246_s19 = smov 128   ;;  %s247_s20 = smov 8  }
  0x12   :  { %27 = dma.hbm_to_vmem [thread:$0]  %s310_s0, 256, %s22_s10, [#allocation3], %s246_s19, %s246_s19, %s247_s20  }
  0x13   :  { %s248_s23 = smov [#allocation5]   ;;  %s195_s27 = scalar_lea.hbm %s311_s1, 256 }
  0x14   :  { %s39_s24 = sshll.u32 %s248_s23, 4  ;;  %p196_p8 = scmp.ne.s32.totalorder %s311_s1, %s195_s27  ;;  %s40_s24 = int_to_ptr.vmem [resolvable:$true] %s39_s24 }
  0x15   :  { %p199_p9 = scmp.lt.u32.totalorder %s195_s27, %s311_s1 }
  0x17   :  { %p201_p10 = pnand %p199_p9, %p196_p8 }
  0x19   :  { %204 = shalt.err (!%p201_p10)
}
  0x1a   :  { %s205_s4 = scalar_lea.vmem %s40_s24, 256  ;;  %p210_p12 = scmp.lt.s32.totalorder %s40_s24, %s40_s24 }
  0x1b   :  { %p206_p11 = scmp.ne.s32.totalorder %s40_s24, %s205_s4  ;;  %p211_p13 = scmp.lt.s32.totalorder %s205_s4, %s205_s4 }
  0x1d   :  { %p212_p0 = por %p211_p13, %p210_p12 }
  0x1f   :  { %p213_p1 = pnand %p212_p0, %p206_p11 }
  0x21   :  { %216 = shalt.err (!%p213_p1)
}
  0x22   :  { %45 = dma.hbm_to_vmem [thread:$0]  %s311_s1, 256, %s40_s24, [#allocation6], %s246_s19, %s246_s19, %s247_s20  }
  0x23   :  { %239 = dma.done.wait [#allocation3], 256  }
  0x24   :  { %240 = vsyncadd [#allocation3], 4294967040 }
  0x25   :  { %241 = dma.done.wait [#allocation6], 256  }
  0x26   :  { %242 = vsyncadd [#allocation6], 4294967040  ;;  %v102_v0 = vld [vmem:[#allocation2] sm:$0xff]  ;;  %v103_v1 = vld [vmem:[#allocation2 + $0x8] sm:$0xff]  ;;  %s249_s1 = smov [#allocation7]  }
  0x27   :  { %v104_v2 = vmul.f32 0.5, %v102_v0  ;;  %v105_v3 = vmul.f32 0.5, %v103_v1  ;;  %v112_v7 = vld [vmem:[#allocation5] sm:$0xff]  ;;  %v113_v8 = vld [vmem:[#allocation5 + $0x8] sm:$0xff]  ;;  %s146_s6 = sshll.u32 %s249_s1, 4  ;;  %s147_s6 = int_to_ptr.vmem [resolvable:$true] %s146_s6 }
  0x28   :  { %v132_v12 = vadd.f32 %v113_v8, %v112_v7  ;;  %s217_s7 = scalar_lea.vmem %s147_s6, 256  ;;  %p222_p3 = scmp.lt.s32.totalorder %s147_s6, %s147_s6 }
  0x29   :  { %169 = vtanh.f32 %v104_v2  ;;  %p218_p2 = scmp.ne.s32.totalorder %s147_s6, %s217_s7  ;;  %p223_p4 = scmp.lt.s32.totalorder %s217_s7, %s217_s7 }
  0x2a   :  { %171 = vtanh.f32 %v105_v3 }
  0x2b   :  { %p224_p5 = por %p223_p4, %p222_p3 }
  0x2d   :  { %p225_p6 = pnand %p224_p5, %p218_p2 }
  0x33   :  { %v170_v4 = vpop.eup %169 }
  0x34   :  { %v172_v5 = vpop.eup %171  ;;  %v108_v6 = vadd.f32 1.0, %v170_v4 }
  0x35   :  { %v109_v9 = vadd.f32 1.0, %v172_v5 }
  0x36   :  { %v110_v10 = vmul.f32 0.5, %v108_v6 }
  0x37   :  { %v111_v11 = vmul.f32 0.5, %v109_v9 }
  0x38   :  { %v126_v13 = vmul.f32 %v112_v7, %v110_v10 }
  0x39   :  { %v127_v14 = vmul.f32 %v113_v8, %v111_v11  ;;  %v130_v15 = vadd.f32 %v111_v11, %v110_v10 }
  0x3b   :  { %v128_v16 = vadd.f32 %v127_v14, %v126_v13  ;;  %v133_v17 = vadd.f32 %v132_v12, %v130_v15 }
  0x3d   :  { %136 = vst [vmem:[#allocation7] sm:$0xff] %v128_v16  ;;  %140 = vst [vmem:[#allocation7 + $0x8] sm:$0xff] %v133_v17 }
  0x3e   :  { %228 = shalt.err (!%p225_p6)
}
  0x3f   :  { %s229_s10 = scalar_lea.hbm %s312_s2, 256 }
  0x40   :  { %p230_p7 = scmp.ne.s32.totalorder %s312_s2, %s229_s10  ;;  %p233_p8 = scmp.lt.u32.totalorder %s229_s10, %s312_s2 }
  0x42   :  { %p235_p9 = pnand %p233_p8, %p230_p7 }
  0x44   :  { %238 = shalt.err (!%p235_p9)
}
  0x45   :  { %152 = dma.vmem_to_hbm [thread:$0]  %s147_s6, 256, %s312_s2, [#allocation4], %s246_s19, %s246_s19, %s247_s20  }
  0x46   :  { %243 = dma.done.wait [#allocation4], 256  }
  0x47   :  { %244 = vsyncadd [#allocation4], 4294967040 }
  0x48   :  { %156 = vsyncpa [#allocation3], 1 }
  0x49   :  { %157 = vsyncpa [#allocation6], 1 }
  0x4a   :  { %158 = vsyncpa [#allocation4], 1 }

</bundles_post_ra>
